<compile_context>
chip_gen: v7x
topology: tpu7x:2x2x1
jax: 0.10.0
libtpu: 0.0.40
codegen_flags: <defaults>
</compile_context>

<pallas_src>
import jax
import jax.numpy as jnp
from jax.experimental import pallas as pl
from jax.experimental.pallas import tpu as pltpu


def _round_up(x: int, m: int) -> int:
    return (x + m - 1) // m * m


def _node_relative_embed_kernel(
    p0_ref, p1_ref,                      # (tm, 3)
    w1_ref, b1_ref,                      # (1, adim)
    w2t_ref, b2_ref,                     # (adim, adim), (1, adim)
    w3t_ref, b3_ref,                     # (adim, adim), (1, adim)
    kv_ref,                              # (3, vdim*3)  (VecLinear with /3 folded in)
    a_ref,                               # (tm, adim)
    v_ref,                               # (tm, vdim*3)
):
    wdt = w2t_ref.dtype

    diff = (p1_ref[...] - p0_ref[...]).astype(jnp.float32)            # (tm, 3)

    # ---- scalar branch: ||diff|| -> 3-layer MLP with LeakyReLU(0.2) ----
    norm = jnp.sqrt(jnp.sum(diff * diff, axis=-1, keepdims=True))     # (tm, 1) f32
    h = norm * w1_ref[...].astype(jnp.float32) + b1_ref[...].astype(jnp.float32)
    h = jnp.maximum(h, 0.2 * h)                                        # LeakyReLU(0.2)
    h = (jnp.dot(h.astype(wdt), w2t_ref[...], preferred_element_type=jnp.float32)
         + b2_ref[...].astype(jnp.float32))
    h = jnp.maximum(h, 0.2 * h)
    h = (jnp.dot(h.astype(wdt), w3t_ref[...], preferred_element_type=jnp.float32)
         + b3_ref[...].astype(jnp.float32))
    a_ref[...] = h.astype(a_ref.dtype)

    # ---- vector branch: outer product expressed as a lane-dense MXU matmul ----
    # v[m, o*3+k] = diff[m, k] * Wv[o, 0] / 3
    v = jnp.dot(diff.astype(kv_ref.dtype), kv_ref[...],
                preferred_element_type=jnp.float32)
    v_ref[...] = v.astype(v_ref.dtype)


def node_relative_embed_mlp(pos_0, pos_1, params, *, row_tile: int = 1024):
    """Pallas equivalent of NodeRelativeEmbedMLP.forward -> (a_out, v_out)."""
    B, N, space = pos_0.shape
    assert space == 3 and pos_1.shape == pos_0.shape
    adim = params["b1"].shape[0]
    vdim = params["Wv"].shape[0]
    dtype = pos_0.dtype

    # Flatten (B, N) into rows; pad only if the row count is not tile-aligned.
    # Padded rows give diff = 0 -> norm = 0: computed then discarded.
    M = B * N
    Mp = max(_round_up(M, 8), 8)
    tm = min(row_tile, Mp)           # per-buffer VMEM stays tiny (<1 MiB) -> fits
    Mp = _round_up(Mp, tm)           # every generation's VMEM, incl. v7x 64 MiB.

    p0 = pos_0.reshape(M, 3)
    p1 = pos_1.reshape(M, 3)
    if Mp != M:
        pad = ((0, Mp - M), (0, 0))
        p0 = jnp.pad(p0, pad)
        p1 = jnp.pad(p1, pad)

    # Weight prep (done once in the wrapper; all in-kernel matmuls are plain A@B).
    w1 = params["W1"].astype(dtype).T                       # (1, adim)
    b1 = params["b1"].astype(dtype)[None, :]                # (1, adim)
    w2t = params["W2"].astype(dtype).T                      # (adim, adim)
    b2 = params["b2"].astype(dtype)[None, :]
    w3t = params["W3"].astype(dtype).T                      # (adim, adim)
    b3 = params["b3"].astype(dtype)[None, :]
    # Kv[i, o*3 + k] = Wv[o, 0] / 3 if i == k else 0   ->  diff @ Kv == v_out flat
    kv = (jnp.eye(3, dtype=dtype)[:, None, :]
          * (params["Wv"][:, 0].astype(dtype) / 3.0)[None, :, None]
          ).reshape(3, vdim * 3)

    const2d = lambda i: (0, 0)
    rows = lambda i: (i, 0)

    a_flat, v_flat = pl.pallas_call(
        _node_relative_embed_kernel,
        out_shape=(
            jax.ShapeDtypeStruct((Mp, adim), dtype),
            jax.ShapeDtypeStruct((Mp, vdim * 3), dtype),
        ),
        grid_spec=pltpu.PrefetchScalarGridSpec(
            num_scalar_prefetch=0,
            grid=(Mp // tm,),
            in_specs=[
                pl.BlockSpec((tm, 3), rows),                 # pos_0 rows
                pl.BlockSpec((tm, 3), rows),                 # pos_1 rows
                pl.BlockSpec((1, adim), const2d),            # W1^T
                pl.BlockSpec((1, adim), const2d),            # b1
                pl.BlockSpec((adim, adim), const2d),         # W2^T
                pl.BlockSpec((1, adim), const2d),            # b2
                pl.BlockSpec((adim, adim), const2d),         # W3^T
                pl.BlockSpec((1, adim), const2d),            # b3
                pl.BlockSpec((3, vdim * 3), const2d),        # Kv
            ],
            out_specs=[
                pl.BlockSpec((tm, adim), rows),
                pl.BlockSpec((tm, vdim * 3), rows),
            ],
        ),
        compiler_params=pltpu.CompilerParams(
            dimension_semantics=("parallel",),               # shard rows across TCs (v7x)
            vmem_limit_bytes=32 * 1024 * 1024,
        ),
    )(p0, p1, w1, b1, w2t, b2, w3t, b3, kv)

    a_out = a_flat[:M].reshape(B, N, adim)
    v_out = v_flat[:M].reshape(B, N, vdim, 3)                # free row-major reshape
    return a_out, v_out


def node_relative_embed_mlp_ref(pos_0, pos_1, params):
    """Pure-JAX reference mirroring the PyTorch forward exactly."""
    diff = pos_1 - pos_0                                               # (B, N, 3)
    norms = jnp.sqrt(jnp.sum(diff * diff, axis=-1, keepdims=True))     # (B, N, 1)
    leaky = lambda x: jnp.where(x >= 0, x, 0.2 * x)
    h = norms @ params["W1"].T + params["b1"]
    h = leaky(h)
    h = h @ params["W2"].T + params["b2"]
    h = leaky(h)
    a_out = h @ params["W3"].T + params["b3"]
    v_out = jnp.einsum("oi,bnik->bnok", params["Wv"], diff[:, :, None, :]) / 3.0
    return a_out, v_out


if __name__ == "__main__":
    # Small, deterministic config.  (For shapes this tiny the pallas_call fixed
    # cost dominates; the kernel pays off only at large batch*node counts.)
    batch, nodes = 2, 16
    adim, vdim = 32, 16

    key = jax.random.PRNGKey(0)
    ks = jax.random.split(key, 9)
    pos_0 = jax.random.normal(ks[0], (batch, nodes, 3), jnp.float32)
    pos_1 = jax.random.normal(ks[1], (batch, nodes, 3), jnp.float32)
    params = {
        "W1": jax.random.normal(ks[2], (adim, 1), jnp.float32),
        "b1": 0.1 * jax.random.normal(ks[3], (adim,), jnp.float32),
        "W2": adim ** -0.5 * jax.random.normal(ks[4], (adim, adim), jnp.float32),
        "b2": 0.1 * jax.random.normal(ks[5], (adim,), jnp.float32),
        "W3": adim ** -0.5 * jax.random.normal(ks[6], (adim, adim), jnp.float32),
        "b3": 0.1 * jax.random.normal(ks[7], (adim,), jnp.float32),
        "Wv": jax.random.normal(ks[8], (vdim, 1), jnp.float32),
    }

    a_out, v_out = node_relative_embed_mlp(pos_0, pos_1, params)
    a_out, v_out = jax.block_until_ready((a_out, v_out))

    a_ref, v_ref = node_relative_embed_mlp_ref(pos_0, pos_1, params)

    assert a_out.shape == (batch, nodes, adim), a_out.shape
    assert v_out.shape == (batch, nodes, vdim, 3), v_out.shape
    assert a_out.dtype == pos_0.dtype and v_out.dtype == pos_0.dtype
    assert jnp.allclose(a_out, a_ref, atol=1e-4, rtol=1e-4), "a_out mismatch"
    assert jnp.allclose(v_out, v_ref, atol=1e-4, rtol=1e-4), "v_out mismatch"

    print("KERNEL_OK")
</pallas_src>

<mosaic_0001>
module attributes {stable_mosaic.version = 11 : i64} {
  func.func @_node_relative_embed_kernel(%arg0: i32, %arg1: memref<32x3xf32, #tpu.memory_space<vmem>>, %arg2: memref<32x3xf32, #tpu.memory_space<vmem>>, %arg3: memref<1x32xf32, #tpu.memory_space<vmem>>, %arg4: memref<1x32xf32, #tpu.memory_space<vmem>>, %arg5: memref<32x32xf32, #tpu.memory_space<vmem>>, %arg6: memref<1x32xf32, #tpu.memory_space<vmem>>, %arg7: memref<32x32xf32, #tpu.memory_space<vmem>>, %arg8: memref<1x32xf32, #tpu.memory_space<vmem>>, %arg9: memref<3x48xf32, #tpu.memory_space<vmem>>, %arg10: memref<32x32xf32, #tpu.memory_space<vmem>>, %arg11: memref<32x48xf32, #tpu.memory_space<vmem>>) attributes {dimension_semantics = [#tpu.dimension_semantics<parallel>], iteration_bounds = array<i64: 1>, scalar_prefetch = 0 : i64, scratch_operands = 0 : i64, tpu.core_type = #tpu.core_type<tc>, window_params = [{transform_indices = @transform_0, window_bounds = array<i64: 32, 3>}, {transform_indices = @transform_1, window_bounds = array<i64: 32, 3>}, {pipeline_mode = #tpu.pipeline_mode<synchronous>, transform_indices = @transform_2, window_bounds = array<i64: 1, 32>}, {pipeline_mode = #tpu.pipeline_mode<synchronous>, transform_indices = @transform_3, window_bounds = array<i64: 1, 32>}, {pipeline_mode = #tpu.pipeline_mode<synchronous>, transform_indices = @transform_4, window_bounds = array<i64: 32, 32>}, {pipeline_mode = #tpu.pipeline_mode<synchronous>, transform_indices = @transform_5, window_bounds = array<i64: 1, 32>}, {pipeline_mode = #tpu.pipeline_mode<synchronous>, transform_indices = @transform_6, window_bounds = array<i64: 32, 32>}, {pipeline_mode = #tpu.pipeline_mode<synchronous>, transform_indices = @transform_7, window_bounds = array<i64: 1, 32>}, {pipeline_mode = #tpu.pipeline_mode<synchronous>, transform_indices = @transform_8, window_bounds = array<i64: 3, 48>}, {transform_indices = @transform_9, window_bounds = array<i64: 32, 32>}, {transform_indices = @transform_10, window_bounds = array<i64: 32, 48>}]} {
    %c0 = arith.constant 0 : index
    %c0_0 = arith.constant 0 : index
    %0 = vector.load %arg2[%c0, %c0_0] : memref<32x3xf32, #tpu.memory_space<vmem>>, vector<32x3xf32>
    %c0_1 = arith.constant 0 : index
    %c0_2 = arith.constant 0 : index
    %1 = vector.load %arg1[%c0_1, %c0_2] : memref<32x3xf32, #tpu.memory_space<vmem>>, vector<32x3xf32>
    %2 = arith.subf %0, %1 : vector<32x3xf32>
    %3 = arith.mulf %2, %2 : vector<32x3xf32>
    %cst = arith.constant dense<0.000000e+00> : vector<32xf32>
    %4 = vector.multi_reduction <add>, %3, %cst [1] : vector<32x3xf32> to vector<32xf32>
    %5 = vector.shape_cast %4 : vector<32xf32> to vector<32x1xf32>
    %6 = math.sqrt %5 : vector<32x1xf32>
    %c0_3 = arith.constant 0 : index
    %c0_4 = arith.constant 0 : index
    %7 = vector.load %arg3[%c0_3, %c0_4] : memref<1x32xf32, #tpu.memory_space<vmem>>, vector<1x32xf32>
    %8 = vector.broadcast %6 : vector<32x1xf32> to vector<32x32xf32>
    %9 = vector.broadcast %7 : vector<1x32xf32> to vector<32x32xf32>
    %10 = arith.mulf %8, %9 : vector<32x32xf32>
    %c0_5 = arith.constant 0 : index
    %c0_6 = arith.constant 0 : index
    %11 = vector.load %arg4[%c0_5, %c0_6] : memref<1x32xf32, #tpu.memory_space<vmem>>, vector<1x32xf32>
    %12 = vector.broadcast %11 : vector<1x32xf32> to vector<32x32xf32>
    %13 = arith.addf %10, %12 : vector<32x32xf32>
    %cst_7 = arith.constant 2.000000e-01 : f32
    %14 = vector.broadcast %cst_7 : f32 to vector<32x32xf32>
    %15 = arith.mulf %14, %13 : vector<32x32xf32>
    %16 = arith.maximumf %13, %15 : vector<32x32xf32>
    %c0_8 = arith.constant 0 : index
    %c0_9 = arith.constant 0 : index
    %17 = vector.load %arg5[%c0_8, %c0_9] : memref<32x32xf32, #tpu.memory_space<vmem>>, vector<32x32xf32>
    %cst_10 = arith.constant dense<0.000000e+00> : vector<32x32xf32>
    %18 = tpu.matmul %16, %17, %cst_10 {dimension_numbers = #tpu.dot_dimension_numbers<[1], [0], [0], [1], [0, 0, 1, 1], [], []>} : vector<32x32xf32>, vector<32x32xf32>, vector<32x32xf32> -> vector<32x32xf32>
    %c0_11 = arith.constant 0 : index
    %c0_12 = arith.constant 0 : index
    %19 = vector.load %arg6[%c0_11, %c0_12] : memref<1x32xf32, #tpu.memory_space<vmem>>, vector<1x32xf32>
    %20 = vector.broadcast %19 : vector<1x32xf32> to vector<32x32xf32>
    %21 = arith.addf %18, %20 : vector<32x32xf32>
    %cst_13 = arith.constant 2.000000e-01 : f32
    %22 = vector.broadcast %cst_13 : f32 to vector<32x32xf32>
    %23 = arith.mulf %22, %21 : vector<32x32xf32>
    %24 = arith.maximumf %21, %23 : vector<32x32xf32>
    %c0_14 = arith.constant 0 : index
    %c0_15 = arith.constant 0 : index
    %25 = vector.load %arg7[%c0_14, %c0_15] : memref<32x32xf32, #tpu.memory_space<vmem>>, vector<32x32xf32>
    %cst_16 = arith.constant dense<0.000000e+00> : vector<32x32xf32>
    %26 = tpu.matmul %24, %25, %cst_16 {dimension_numbers = #tpu.dot_dimension_numbers<[1], [0], [0], [1], [0, 0, 1, 1], [], []>} : vector<32x32xf32>, vector<32x32xf32>, vector<32x32xf32> -> vector<32x32xf32>
    %c0_17 = arith.constant 0 : index
    %c0_18 = arith.constant 0 : index
    %27 = vector.load %arg8[%c0_17, %c0_18] : memref<1x32xf32, #tpu.memory_space<vmem>>, vector<1x32xf32>
    %28 = vector.broadcast %27 : vector<1x32xf32> to vector<32x32xf32>
    %29 = arith.addf %26, %28 : vector<32x32xf32>
    %c0_19 = arith.constant 0 : index
    %c0_20 = arith.constant 0 : index
    %30 = vector.load %arg10[%c0_19, %c0_20] : memref<32x32xf32, #tpu.memory_space<vmem>>, vector<32x32xf32>
    tpu.vector_store %arg10[%c0_19, %c0_20], %29 {strides = array<i32>} : memref<32x32xf32, #tpu.memory_space<vmem>>, vector<32x32xf32>,
    %c0_21 = arith.constant 0 : index
    %c0_22 = arith.constant 0 : index
    %31 = vector.load %arg9[%c0_21, %c0_22] : memref<3x48xf32, #tpu.memory_space<vmem>>, vector<3x48xf32>
    %cst_23 = arith.constant dense<0.000000e+00> : vector<32x48xf32>
    %32 = tpu.matmul %2, %31, %cst_23 {dimension_numbers = #tpu.dot_dimension_numbers<[1], [0], [0], [1], [0, 0, 1, 1], [], []>} : vector<32x3xf32>, vector<3x48xf32>, vector<32x48xf32> -> vector<32x48xf32>
    %c0_24 = arith.constant 0 : index
    %c0_25 = arith.constant 0 : index
    %33 = vector.load %arg11[%c0_24, %c0_25] : memref<32x48xf32, #tpu.memory_space<vmem>>, vector<32x48xf32>
    tpu.vector_store %arg11[%c0_24, %c0_25], %32 {strides = array<i32>} : memref<32x48xf32, #tpu.memory_space<vmem>>, vector<32x48xf32>,
    return
  }
  func.func @transform_0(%arg0: i32) -> (i32, i32) {
    %c0_i32 = arith.constant 0 : i32
    %c0_i32_0 = arith.constant 0 : i32
    return %arg0, %c0_i32 : i32, i32
  }
  func.func @transform_1(%arg0: i32) -> (i32, i32) {
    %c0_i32 = arith.constant 0 : i32
    %c0_i32_0 = arith.constant 0 : i32
    return %arg0, %c0_i32 : i32, i32
  }
  func.func @transform_2(%arg0: i32) -> (i32, i32) {
    %c0_i32 = arith.constant 0 : i32
    %c0_i32_0 = arith.constant 0 : i32
    %c0_i32_1 = arith.constant 0 : i32
    return %c0_i32, %c0_i32_0 : i32, i32
  }
  func.func @transform_3(%arg0: i32) -> (i32, i32) {
    %c0_i32 = arith.constant 0 : i32
    %c0_i32_0 = arith.constant 0 : i32
    %c0_i32_1 = arith.constant 0 : i32
    return %c0_i32, %c0_i32_0 : i32, i32
  }
  func.func @transform_4(%arg0: i32) -> (i32, i32) {
    %c0_i32 = arith.constant 0 : i32
    %c0_i32_0 = arith.constant 0 : i32
    %c0_i32_1 = arith.constant 0 : i32
    return %c0_i32, %c0_i32_0 : i32, i32
  }
  func.func @transform_5(%arg0: i32) -> (i32, i32) {
    %c0_i32 = arith.constant 0 : i32
    %c0_i32_0 = arith.constant 0 : i32
    %c0_i32_1 = arith.constant 0 : i32
    return %c0_i32, %c0_i32_0 : i32, i32
  }
  func.func @transform_6(%arg0: i32) -> (i32, i32) {
    %c0_i32 = arith.constant 0 : i32
    %c0_i32_0 = arith.constant 0 : i32
    %c0_i32_1 = arith.constant 0 : i32
    return %c0_i32, %c0_i32_0 : i32, i32
  }
  func.func @transform_7(%arg0: i32) -> (i32, i32) {
    %c0_i32 = arith.constant 0 : i32
    %c0_i32_0 = arith.constant 0 : i32
    %c0_i32_1 = arith.constant 0 : i32
    return %c0_i32, %c0_i32_0 : i32, i32
  }
  func.func @transform_8(%arg0: i32) -> (i32, i32) {
    %c0_i32 = arith.constant 0 : i32
    %c0_i32_0 = arith.constant 0 : i32
    %c0_i32_1 = arith.constant 0 : i32
    return %c0_i32, %c0_i32_0 : i32, i32
  }
  func.func @transform_9(%arg0: i32) -> (i32, i32) {
    %c0_i32 = arith.constant 0 : i32
    %c0_i32_0 = arith.constant 0 : i32
    return %arg0, %c0_i32 : i32, i32
  }
  func.func @transform_10(%arg0: i32) -> (i32, i32) {
    %c0_i32 = arith.constant 0 : i32
    %c0_i32_0 = arith.constant 0 : i32
    return %arg0, %c0_i32 : i32, i32
  }
}

</mosaic_0001>

<bundles_post_ra>
// kernel: tpu_custom_call.1
= control target key start
LH: loop header
LB: loop body
LE: loop exit
PB: predicated region body
PF: predicated region fallthrough
CT: control target
= control target key end

     0   :  { %16 = vsyncpa [#allocation3], 0  ;;  %vm52_vm0 = vcmask 23552   ;;  %s844_s0 = inlined_call_operand.vmem [shape: f32[32,3], index: 0, kind: input, shape index: {}]   ;;  %s845_s1 = inlined_call_operand.vmem [shape: f32[32,3], index: 1, kind: input, shape index: {}]   ;;  %s846_s2 = inlined_call_operand.vmem [shape: f32[1,32], index: 2, kind: input, shape index: {}]   ;;  %s847_s3 = inlined_call_operand.vmem [shape: f32[1,32], index: 3, kind: input, shape index: {}]   ;;  %s848_s4 = inlined_call_operand.vmem [shape: f32[32,32], index: 4, kind: input, shape index: {}]   ;;  %s849_s5 = inlined_call_operand.vmem [shape: f32[1,32], index: 5, kind: input, shape index: {}]   ;;  %s850_s6 = inlined_call_operand.vmem [shape: f32[32,32], index: 6, kind: input, shape index: {}]   ;;  %s851_s7 = inlined_call_operand.vmem [shape: f32[1,32], index: 7, kind: input, shape index: {}]   ;;  %s852_s8 = inlined_call_operand.vmem [shape: f32[3,48], index: 8, kind: input, shape index: {}]   ;;  %s853_s9 = inlined_call_operand.hbm [shape: f32[32,32], index: 9, kind: output, shape index: {0}]   ;;  %s854_s10 = inlined_call_operand.hbm [shape: f32[32,48], index: 10, kind: output, shape index: {1}]  }
   0x1   :  { %v38_v0 = vld [vmem:[%s845_s1 + $0x10] sm:$0xff]  ;;  %v36_v2 = vld [vmem:[%s845_s1] sm:$0xff]  ;;  %v39_v5 = vld [vmem:[%s845_s1 + $0x18] sm:$0xff] }
   0x2   :  { %v42_v1 = vld [vmem:[%s844_s0 + $0x10] sm:$0xff]  ;;  %v40_v4 = vld [vmem:[%s844_s0] sm:$0xff]  ;;  %v43_v6 = vld [vmem:[%s844_s0 + $0x18] sm:$0xff] }
   0x3   :  { %v711_v3 = vsub.f32 %v38_v0, %v42_v1  ;;  %v722_v7 = vsub.f32 %v36_v2, %v40_v4  ;;  %v724_v8 = vsub.f32 %v39_v5, %v43_v6  ;;  %v37_v9 = vld [vmem:[%s845_s1 + $0x8] sm:$0xff] }
   0x4   :  { %v41_v10 = vld [vmem:[%s844_s0 + $0x8] sm:$0xff] }
   0x5   :  { %17 = vsyncpa [#allocation5], 0  ;;  %v50_v11 = vmul.f32 %v711_v3, %v711_v3  ;;  %v734_v12 = vsub.f32 %v37_v9, %v41_v10  ;;  %v48_v13 = vmul.f32 %v722_v7, %v722_v7  ;;  %v51_v14 = vmul.f32 %v724_v8, %v724_v8  ;;  %v123_v20 = vld [vmem:[%s848_s4] sm:$0xff]  ;;  %v124_v21 = vld [vmem:[%s848_s4 + $0x8] sm:$0xff]  ;;  %s644_s0 = smov [#allocation4]  }
   0x6   :  { %v565_v22 = vpack.c.bf16 %v124_v21, %v123_v20  ;;  %v125_v23 = vld [vmem:[%s848_s4 + $0x10] sm:$0xff]  ;;  %v126_v24 = vld [vmem:[%s848_s4 + $0x18] sm:$0xff]  ;;  %v491_v35 = vld [vmem:[%s846_s2] ss:$0 sm:$0xff]  ;;  %vm134_vm9 = vcmask 261120   ;;  %vm365_vm10 = vcmask 1042432  }
   0x7   :  { %v59_v15 = vsel %vm52_vm0, %v50_v11, 0.0  ;;  %v49_v16 = vmul.f32 %v734_v12, %v734_v12  ;;  %v53_v17 = vsel %vm52_vm0, %v48_v13, 0.0  ;;  %v62_v18 = vsel %vm52_vm0, %v51_v14, 0.0  ;;  %v492_v44 = vld [vmem:[%s847_s3] ss:$0 sm:$0xff]  ;;  %v241_v6 = vld [vmem:[%s850_s6 + $0x8] sm:$0xff] }
   0x8   :  { %60 = vadd.xlane.f32.xlu1 %v59_v15  ;;  %54 = vadd.xlane.f32.xlu0 %v53_v17  ;;  %v569_v25 = vpack.c.bf16 %v126_v24, %v125_v23  ;;  %v240_v5 = vld [vmem:[%s850_s6] sm:$0xff]  ;;  %v242_v10 = vld [vmem:[%s850_s6 + $0x10] sm:$0xff]  ;;  %v243_v11 = vld [vmem:[%s850_s6 + $0x18] sm:$0xff]  ;;  %vm454_vm11 = vcmask 392192   ;;  %s476_s1 = sshll.u32 %s644_s0, 4  ;;  %s811_s1 = int_to_ptr.vmem [resolvable:$true] %s476_s1 }
   0x9   :  { %v56_v19 = vsel %vm52_vm0, %v49_v16, 0.0  ;;  %566 = vmatprep.subr.bf16.mxu0 %v565_v22  ;;  %v573_v9 = vpack.c.bf16 %v241_v6, %v240_v5  ;;  %v352_v13 = vld [vmem:[%s852_s8] sm:$0x7]  ;;  %s643_s8 = smov [#allocation2]  }
   0xa   :  { %568 = vmatpush3.bf16.msra.mxu0 %v565_v22  ;;  %v493_v14 = vld [vmem:[%s849_s5] ss:$0 sm:$0xff]  ;;  %s464_s28 = sshll.u32 %s643_s8, 4  ;;  %s465_s28 = int_to_ptr.vmem [resolvable:$true] %s464_s28 }
   0xb   :  { %570 = vmatprep.subr.bf16.mxu0 %v569_v25  ;;  %574 = vmatprep.subr.bf16.mxu1 %v573_v9  ;;  %p600_p1 = scmp.lt.s32.totalorder %s465_s28, %s465_s28 }
   0xc   :  { %63 = vadd.xlane.f32.xlu1 %v62_v18  ;;  %57 = vadd.xlane.f32.xlu0 %v56_v19 }
   0xd   :  { %576 = vmatpush3.bf16.msra.mxu1 %v573_v9 }
   0xe   :  { %572 = vmatpush3.bf16.msra.mxu0 %v569_v25 }
   0xf   :  { %557 = vmatprep.subr.msk.mxu0 %vm365_vm10, %v352_v13 }
  0x95   :  { %v61_v26 = vpop.xlane.xlu1 %60  ;;  %v55_v27 = vpop.xlane.xlu0 %54 }
  0x96   :  { %587 = vrsqrt.f32 %v61_v26  ;;  %vm81_vm1 = vcmp.eq.f32.partialorder %v61_v26, inf  ;;  %v84_v33 = vand.u32 2147483648, %v61_v26  ;;  %vm83_vm2 = vcmp.eq.f32.partialorder %v61_v26, 0.0 }
  0x97   :  { %589 = vrsqrt.f32 %v55_v27  ;;  %vm67_vm3 = vcmp.eq.f32.partialorder %v55_v27, inf  ;;  %v70_v37 = vand.u32 2147483648, %v55_v27  ;;  %vm69_vm4 = vcmp.eq.f32.partialorder %v55_v27, 0.0 }
  0x99   :  { %v64_v28 = vpop.xlane.xlu1 %63  ;;  %v58_v29 = vpop.xlane.xlu0 %57 }
  0x9a   :  { %591 = vrsqrt.f32 %v64_v28  ;;  %vm88_vm5 = vcmp.eq.f32.partialorder %v64_v28, inf  ;;  %v91_v46 = vand.u32 2147483648, %v64_v28  ;;  %vm90_vm6 = vcmp.eq.f32.partialorder %v64_v28, 0.0 }
  0x9b   :  { %593 = vrsqrt.f32 %v58_v29  ;;  %vm74_vm7 = vcmp.eq.f32.partialorder %v58_v29, inf  ;;  %v77_v50 = vand.u32 2147483648, %v58_v29  ;;  %vm76_vm8 = vcmp.eq.f32.partialorder %v58_v29, 0.0 }
  0xa0   :  { %v588_v30 = vpop.eup %587 }
  0xa1   :  { %v590_v31 = vpop.eup %589  ;;  %v80_v32 = vmul.f32 %v588_v30, %v61_v26 }
  0xa2   :  { %v66_v34 = vmul.f32 %v590_v31, %v55_v27 }
  0xa3   :  { %v82_v36 = vsel %vm81_vm1, %v61_v26, %v80_v32  ;;  %v498_v32 = vld [vmem:[%s851_s7] ss:$0 sm:$0xff]  ;;  %s595_s7 = scalar_lea.vmem %s465_s28, 512 }
  0xa4   :  { %v592_v38 = vpop.eup %591  ;;  %v68_v39 = vsel %vm67_vm3, %v55_v27, %v66_v34  ;;  %v85_v40 = vsel %vm83_vm2, %v84_v33, %v82_v36  ;;  %p596_p0 = scmp.ne.s32.totalorder %s465_s28, %s595_s7  ;;  %p601_p2 = scmp.lt.s32.totalorder %s595_s7, %s595_s7 }
  0xa5   :  { %v594_v41 = vpop.eup %593  ;;  %v87_v42 = vmul.f32 %v592_v38, %v64_v28  ;;  %v71_v43 = vsel %vm69_vm4, %v70_v37, %v68_v39  ;;  %v102_v45 = vmul.f32 %v491_v35, %v85_v40 }
  0xa6   :  { %v73_v47 = vmul.f32 %v594_v41, %v58_v29  ;;  %v100_v48 = vmul.f32 %v491_v35, %v71_v43  ;;  %p602_p3 = por %p601_p2, %p600_p1 }
  0xa7   :  { %v89_v49 = vsel %vm88_vm5, %v64_v28, %v87_v42  ;;  %v113_v55 = vadd.f32 %v492_v44, %v102_v45 }
  0xa8   :  { %v92_v51 = vsel %vm90_vm6, %v91_v46, %v89_v49  ;;  %v75_v52 = vsel %vm74_vm7, %v58_v29, %v73_v47  ;;  %v111_v53 = vadd.f32 %v492_v44, %v100_v48  ;;  %p603_p4 = pnand %p602_p3, %p596_p0 }
  0xa9   :  { %v78_v54 = vsel %vm76_vm8, %v77_v50, %v75_v52  ;;  %v103_v56 = vmul.f32 %v491_v35, %v92_v51  ;;  %v117_v62 = vmul.f32 0.2, %v113_v55 }
  0xaa   :  { %v115_v57 = vmul.f32 0.2, %v111_v53  ;;  %v101_v58 = vmul.f32 %v491_v35, %v78_v54 }
  0xab   :  { %v114_v61 = vadd.f32 %v492_v44, %v103_v56  ;;  %v121_v2 = vmax.f32 %v113_v55, %v117_v62 }
  0xac   :  { %v119_v59 = vmax.f32 %v111_v53, %v115_v57  ;;  %v112_v60 = vadd.f32 %v492_v44, %v101_v58 }
  0xad   :  { %v118_v1 = vmul.f32 0.2, %v114_v61 }
  0xae   :  { %537 = vmatprep.mubr.msk.f32.mxu0 %vm134_vm9, %v119_v59  ;;  %v116_v63 = vmul.f32 0.2, %v112_v60 }
  0xaf   :  { %v122_v4 = vmax.f32 %v114_v61, %v118_v1 }
  0xb0   :  { %v120_v0 = vmax.f32 %v112_v60, %v116_v63 }
  0xb2   :  { %538 = vmatmul.mubr.msk.f32.vlgmr.msra.gmra.mrb[0].mxu0 %vm134_vm9, %v120_v0 }
  0xb3   :  { %540 = vmatprep.mubr.msk.f32.mxu0 %vm134_vm9, %v121_v2  ;;  %558 = vmatpush3.msk.msra.mxu0 %vm365_vm10, %v352_v13 }
  0xb6   :  { %541 = vmatmul.mubr.msk.f32.gmra.mrb[2].mxu0 %vm134_vm9, %v122_v4 }
  0xb7   :  { %559 = vmatprep.mubr.msk.f32.mxu0 %vm52_vm0, %v722_v7  ;;  %v577_v7 = vpack.c.bf16 %v243_v11, %v242_v10 }
  0xb9   :  { %578 = vmatprep.subr.bf16.mxu1 %v577_v7 }
  0xba   :  { %580 = vmatpush3.bf16.msra.mxu1 %v577_v7  ;;  %560 = vmatmul.mubr.msk.f32.vlgmr.msra.gmra.mrb[4].mxu0 %vm52_vm0, %v734_v12 }
  0xbb   :  { %581 = vmatprep.subr.msk.mxu1 %vm365_vm10, %v352_v13 }
 0x185   :  { %v539_v15 = vpop.f32.mrb[0].mxu0 }
 0x186   :  { %v219_v16 = vadd.f32 %v539_v15, %v493_v14  ;;  %v213_v17 = vpop.f32.mrb[1].mxu0 }
 0x187   :  { %v214_v18 = vadd.f32 %v493_v14, %v213_v17 }
 0x188   :  { %v233_v19 = vmul.f32 0.2, %v219_v16 }
 0x189   :  { %v232_v20 = vmul.f32 0.2, %v214_v18  ;;  %v542_v21 = vpop.f32.mrb[2].mxu0 }
 0x18a   :  { %v229_v22 = vadd.f32 %v542_v21, %v493_v14  ;;  %v223_v23 = vpop.f32.mrb[3].mxu0  ;;  %v237_v26 = vmax.f32 %v219_v16, %v233_v19 }
 0x18b   :  { %v224_v24 = vadd.f32 %v493_v14, %v223_v23  ;;  %v236_v25 = vmax.f32 %v214_v18, %v232_v20 }
 0x18c   :  { %v235_v27 = vmul.f32 0.2, %v229_v22 }
 0x18d   :  { %v234_v28 = vmul.f32 0.2, %v224_v24  ;;  %551 = vmatprep.mubr.msk.f32.mxu1 %vm134_vm9, %v236_v25  ;;  %v561_v30 = vpop.f32.mrb[4].mxu0 }
 0x18e   :  { %552 = vmatmul.mubr.msk.f32.vlgmr.msra.gmra.mrb[0].mxu1 %vm134_vm9, %v237_v26  ;;  %v239_v29 = vmax.f32 %v229_v22, %v235_v27  ;;  %v435_v31 = vpop.f32.mrb[5].mxu0  ;;  %456 = vst.msk [vmem:[#allocation4 + $0x8] sm:$0xff] %vm454_vm11, %v561_v30 }
 0x18f   :  { %v238_v12 = vmax.f32 %v224_v24, %v234_v28  ;;  %582 = vmatpush3.msk.msra.mxu1 %vm365_vm10, %v352_v13  ;;  %455 = vst.msk [vmem:[#allocation4] sm:$0xff] %vm454_vm11, %v435_v31 }
 0x191   :  { %554 = vmatprep.mubr.msk.f32.mxu1 %vm134_vm9, %v238_v12 }
 0x192   :  { %555 = vmatmul.mubr.msk.f32.gmra.mrb[2].mxu1 %vm134_vm9, %v239_v29 }
 0x193   :  { %562 = vmatprep.mubr.msk.f32.mxu1 %vm52_vm0, %v711_v3 }
 0x196   :  { %563 = vmatmul.mubr.msk.f32.vlgmr.msra.gmra.mrb[4].mxu1 %vm52_vm0, %v724_v8 }
 0x261   :  { %v553_v33 = vpop.f32.mrb[0].mxu1 }
 0x262   :  { %v335_v34 = vadd.f32 %v553_v33, %v498_v32  ;;  %v329_v35 = vpop.f32.mrb[1].mxu1 }
 0x263   :  { %v330_v36 = vadd.f32 %v498_v32, %v329_v35 }
 0x264   :  { %349 = vst.msk [vmem:[#allocation2 + $0x8] sm:$0xff] %vm134_vm9, %v335_v34 }
 0x265   :  { %348 = vst.msk [vmem:[#allocation2] sm:$0xff] %vm134_vm9, %v330_v36  ;;  %v556_v3 = vpop.f32.mrb[2].mxu1 }
 0x266   :  { %v345_v8 = vadd.f32 %v556_v3, %v498_v32  ;;  %v339_v37 = vpop.f32.mrb[3].mxu1 }
 0x267   :  { %v340_v38 = vadd.f32 %v498_v32, %v339_v37 }
 0x268   :  { %351 = vst.msk [vmem:[#allocation2 + $0x18] sm:$0xff] %vm134_vm9, %v345_v8 }
 0x269   :  { %350 = vst.msk [vmem:[#allocation2 + $0x10] sm:$0xff] %vm134_vm9, %v340_v38  ;;  %v564_v39 = vpop.f32.mrb[4].mxu1 }
 0x26a   :  { %458 = vst.msk [vmem:[#allocation4 + $0x18] sm:$0xff] %vm454_vm11, %v564_v39  ;;  %v445_v40 = vpop.f32.mrb[5].mxu1 }
 0x26b   :  { %606 = shalt.err (!%p603_p4)
}
 0x26c   :  { %s607_s11 = scalar_lea.hbm %s853_s9, 512 }
 0x26d   :  { %p608_p5 = scmp.ne.s32.totalorder %s853_s9, %s607_s11  ;;  %p611_p6 = scmp.lt.u32.totalorder %s607_s11, %s853_s9 }
 0x26f   :  { %p613_p7 = pnand %p611_p6, %p608_p5 }
 0x271   :  { %616 = shalt.err (!%p613_p7)
}
 0x272   :  { %s645_s15 = smov 128   ;;  %s646_s16 = smov 8   ;;  %457 = vst.msk [vmem:[#allocation4 + $0x10] sm:$0xff] %vm454_vm11, %v445_v40 }
 0x273   :  { %470 = dma.vmem_to_hbm [thread:$0]  %s465_s28, 512, %s853_s9, [#allocation3], %s645_s15, %s645_s15, %s646_s16  }
 0x274   :  { %s617_s3 = scalar_lea.vmem %s811_s1, 512  ;;  %p622_p9 = scmp.lt.s32.totalorder %s811_s1, %s811_s1 }
 0x275   :  { %p618_p8 = scmp.ne.s32.totalorder %s811_s1, %s617_s3  ;;  %p623_p10 = scmp.lt.s32.totalorder %s617_s3, %s617_s3 }
 0x277   :  { %p624_p11 = por %p623_p10, %p622_p9 }
 0x279   :  { %p625_p12 = pnand %p624_p11, %p618_p8 }
 0x27b   :  { %628 = shalt.err (!%p625_p12)
}
 0x27c   :  { %s629_s20 = scalar_lea.hbm %s854_s10, 512 }
 0x27d   :  { %p630_p13 = scmp.ne.s32.totalorder %s854_s10, %s629_s20  ;;  %p633_p0 = scmp.lt.u32.totalorder %s629_s20, %s854_s10 }
 0x27f   :  { %p635_p1 = pnand %p633_p0, %p630_p13 }
 0x281   :  { %638 = shalt.err (!%p635_p1)
}
 0x282   :  { %482 = dma.vmem_to_hbm [thread:$0]  %s811_s1, 512, %s854_s10, [#allocation5], %s645_s15, %s645_s15, %s646_s16  }
 0x283   :  { %639 = dma.done.wait [#allocation3], 512  }
 0x284   :  { %640 = vsyncadd [#allocation3], 4294966784 }
 0x285   :  { %641 = dma.done.wait [#allocation5], 512  }
 0x286   :  { %642 = vsyncadd [#allocation5], 4294966784 }
 0x287   :  { %489 = vsyncpa [#allocation3], 1 }
 0x288   :  { %490 = vsyncpa [#allocation5], 1 }

</bundles_post_ra>
